<compile_context>
chip_gen: v5e
topology: v5e:2x2
jax: 0.10.0
libtpu: 0.0.40
codegen_flags: <defaults>
</compile_context>

<pallas_src>
import jax
import jax.numpy as jnp
from jax import lax
from jax.experimental import pallas as pl
from jax.experimental.pallas import tpu as pltpu


def _round_up(x, m):
    return (x + m - 1) // m * m


def _choose_tb(B, S, rows_target=512, min_steps=4):
    """Pick the per-step batch tile TB.

    Preferences (in order):
      * TB is a multiple of 8 or TB == B (sublane-dense output blocks; satisfies the
        (8,128) BlockSpec divisibility/full-extent rule).
      * TB * S ~ rows_target flat MXU rows per grid step (amortize ~0.35 us/step;
        v6e/v7x like 512-1024, v5e likes multiples of 128).
      * at least `min_steps` grid steps when possible (v7x has 2 TCs sharing the
        "parallel" axis; >= 2 steps per core avoids idling a core).
    """
    divs = [d for d in range(1, B + 1) if B % d == 0]
    cands = [d for d in divs if d % 8 == 0 or d == B]       # always non-empty (B itself)
    cap = max(1, rows_target // max(S, 1))
    fits = [d for d in cands if d <= cap] or [min(cands)]
    tb = max(fits)
    stepped = [d for d in fits if B // d >= min_steps]
    if stepped:
        tb = max(stepped)
    else:
        two = [d for d in fits if B // d >= 2]
        if two:
            tb = max(two)
    return tb


def _vmem_cap_bytes():
    """Per-chip VMEM budget with headroom (v7x only has 64 MiB/TC)."""
    try:
        return int(pltpu.get_tpu_info().vmem_capacity_bytes * 3 // 4)
    except Exception:
        return 48 * 1024 * 1024        # safe on v5e/v6e (128 MiB) and v7x (64 MiB)


def _estimate_vmem_bytes(tb, s, e, h1, o_pad, v_pad, use_vmem_table, weight_bufs):
    """Rough working-set estimate used to derive vmem_limit_bytes (with headroom added later)."""
    n = tb * s
    weights = e * h1 * 2 + h1 * 4 + h1 * o_pad * 2 + o_pad * 4   # bf16 weights + f32 biases
    if use_vmem_table:
        weights += v_pad * e * 2                                  # bf16 table resident
    total = weight_bufs * weights
    total += 2 * tb * o_pad * 4                                   # double-buffered output block
    if use_vmem_table:
        total += 2 * n * 4                                        # double-buffered token block
        total += n * v_pad * 2 + n * e * 4                        # one-hot + gathered activations
    else:
        total += 2 * n * e * 2                                    # xbuf (2 slots, bf16)
    total += n * h1 * 4                                           # hidden activations
    return total


# ----------------------------------------------------------------------------------------
# Kernel A: small vocab -- bf16 table resident in VMEM, gather as a one-hot MXU matmul.
# ----------------------------------------------------------------------------------------
def mlp_vmem_kernel(tok_ref,            # VMEM: (TB*S, 1) int32 token ids for this step
                    emb_ref,            # VMEM: (V_pad, E) bf16 embedding table (resident)
                    w12_ref, b12_ref,   # VMEM: (E, H1) bf16 fused first+hidden weight, (1, H1) f32
                    wl_ref, bl_ref,     # VMEM: (H1, O_pad) bf16, (1, O_pad) f32
                    o_ref):             # VMEM out: (TB, O_pad) f32
    tb = o_ref.shape[0]
    n = tok_ref.shape[0]                # TB * S flat rows for this grid step
    seq = n // tb
    v_pad = emb_ref.shape[0]

    # ---- embedding gather as a one-hot matmul (exact: one-hot entries are 0/1 in bf16) ----
    tok = tok_ref[...]                                                   # (N, 1) int32
    eq = jax.lax.broadcasted_iota(jnp.int32, (n, v_pad), 1) == tok       # (N, V_pad) bool
    onehot = jnp.where(eq, 1.0, 0.0).astype(jnp.bfloat16)                # (N, V_pad) bf16
    x = jnp.dot(onehot, emb_ref[...], preferred_element_type=jnp.float32)  # (N, E) f32

    # ---- fused first_fc @ hidden_fc (module has no activation between them) ----
    h = jnp.dot(x.astype(jnp.bfloat16), w12_ref[...],
                preferred_element_type=jnp.float32) + b12_ref[...]
    h = jnp.maximum(h, 0.0)                                              # ReLU in f32 (VPU)
    # dropout == identity at inference time

    # ---- max-pool over the sequence: (N, H1) -> (TB, S, H1), reduce over S (XLU) ----
    # S is a multiple of 8 here, so the reshape is a pure sublane regroup (no VMEM copy).
    pooled = jnp.max(h.reshape(tb, seq, h.shape[-1]), axis=1)            # (TB, H1) f32

    out = jnp.dot(pooled.astype(jnp.bfloat16), wl_ref[...],
                  preferred_element_type=jnp.float32) + bl_ref[...]
    o_ref[...] = out.astype(o_ref.dtype)                                 # lane-dense (TB, O_pad)


# ----------------------------------------------------------------------------------------
# Kernel B: large vocab -- bf16 table in HBM, per-row DMA gather double-buffered across steps.
# (Not exercised by the tiny demo below; selected automatically when the table is too big
#  to sit in VMEM.)
# ----------------------------------------------------------------------------------------
def mlp_hbm_kernel(tok_smem,            # SMEM scalar prefetch: (B*S,) int32 token ids
                   emb_hbm,             # HBM (pl.ANY): (V, E) bf16 embedding table
                   w12_ref, b12_ref,    # VMEM: (E, H1) bf16, (1, H1) f32
                   wl_ref, bl_ref,      # VMEM: (H1, O_pad) bf16, (1, O_pad) f32
                   o_ref,               # VMEM out: (TB, O_pad) f32
                   xbuf,                # VMEM scratch: (2, TB*S, E) bf16 (double buffer)
                   sem):                # DMA semaphores: (2,) one per slot
    i = pl.program_id(0)
    nsteps = pl.num_programs(0)
    tb = o_ref.shape[0]
    rows = xbuf.shape[1]                # TB * S
    seq = rows // tb
    slot = i % 2

    def issue_gather(step, dst_slot):
        base = step * rows
        def body(t, carry):
            pltpu.make_async_copy(emb_hbm.at[pl.ds(tok_smem[base + t], 1)],
                                  xbuf.at[dst_slot, pl.ds(t, 1)],
                                  sem.at[dst_slot]).start()
            return carry
        lax.fori_loop(0, rows, body, 0, unroll=8)

    def wait_gather(dst_slot):
        def body(t, carry):
            # descriptor only needs the right shape for the wait amount
            pltpu.make_async_copy(emb_hbm.at[pl.ds(0, 1)],
                                  xbuf.at[dst_slot, pl.ds(0, 1)],
                                  sem.at[dst_slot]).wait()
            return carry
        lax.fori_loop(0, rows, body, 0, unroll=8)

    @pl.when(i == 0)
    def _():                            # prologue: first step gathers its own rows
        issue_gather(0, 0)

    @pl.when(i + 1 < nsteps)
    def _():                            # prefetch next step's rows into the other slot
        issue_gather(i + 1, 1 - slot)

    wait_gather(slot)                   # drain only this step's gather

    x = xbuf[slot]                                                       # (rows, E) bf16
    h = jnp.dot(x, w12_ref[...], preferred_element_type=jnp.float32) + b12_ref[...]
    h = jnp.maximum(h, 0.0)
    pooled = jnp.max(h.reshape(tb, seq, h.shape[-1]), axis=1)            # (TB, H1) f32
    out = jnp.dot(pooled.astype(jnp.bfloat16), wl_ref[...],
                  preferred_element_type=jnp.float32) + bl_ref[...]
    o_ref[...] = out.astype(o_ref.dtype)


# ----------------------------------------------------------------------------------------
# Wrapper
# ----------------------------------------------------------------------------------------
def mlp_forward(text, emb_table, w1, b1, w2, b2, wl, bl, *,
                rows_target=512, vmem_table_max_bytes=4 * 1024 * 1024,
                force_hbm_gather=False):
    B, S = text.shape
    V, E = emb_table.shape
    H1 = w2.shape[1]
    O = wl.shape[1]

    TB = _choose_tb(B, S, rows_target)
    grid = (B // TB,)
    N = TB * S

    # ---- offline weight prep ---------------------------------------------------------
    # The module applies NO activation between first_fc and the (single) hidden fc, so the
    # two linears fuse exactly into one (E, H1) matmul.
    # TODO(synk): len(hidden_dims) > 2 would add extra ReLU'd (Hi, Hi+1) MXU passes in-kernel.
    w12 = (w1 @ w2).astype(jnp.float32)
    b12 = (b1 @ w2 + b2).astype(jnp.float32)

    O_pad = _round_up(O, 128)                               # lane-dense output slab
    wl_p = jnp.zeros((H1, O_pad), jnp.float32).at[:, :O].set(wl)
    bl_p = jnp.zeros((1, O_pad), jnp.float32).at[:, :O].set(bl)

    # bf16 MXU operands (f32 accumulation in-kernel); biases stay f32.
    # TODO(synk): on v7x only, fp8 weight operands could halve weight VMEM again.
    w12_b = w12.astype(jnp.bfloat16)
    wl_b = wl_p.astype(jnp.bfloat16)

    V_pad = _round_up(V, 128)
    table_bytes = V_pad * E * 2
    use_vmem_table = (not force_hbm_gather) and (table_bytes <= vmem_table_max_bytes)

    cap = _vmem_cap_bytes()
    resident_bytes = (E * H1 * 2 + H1 * 4 + H1 * O_pad * 2 + O_pad * 4
                      + (table_bytes if use_vmem_table else 0))
    # Single-buffer the constant-index weights only when double-buffering them would be large
    # (matters on v7x's 64 MiB VMEM); tiny demo weights keep the default double buffering.
    single_buffer_weights = (2 * resident_bytes) > (cap // 3)
    weight_bufs = 1 if single_buffer_weights else 2
    # TODO(synk): for weights too large even single-buffered, add a K-split grid axis
    # ("arbitrary", last) with an f32 VMEM accumulator instead of holding full weights resident.

    est = _estimate_vmem_bytes(TB, S, E, H1, O_pad, V_pad, use_vmem_table, weight_bufs)
    vmem_limit = max(16 * 1024 * 1024, min(cap, est + est // 2 + 2 * 1024 * 1024))

    def const_spec(shape):
        kw = {"pipeline_mode": pl.Buffered(1)} if single_buffer_weights else {}
        return pl.BlockSpec(shape, lambda i, *_: (0,) * len(shape), **kw)

    out_spec = pl.BlockSpec((TB, O_pad), lambda i, *_: (i, 0))

    if use_vmem_table:
        # ---- Path A: VMEM-resident bf16 table, one-hot MXU gather ----------------------
        emb_p = jnp.zeros((V_pad, E), jnp.bfloat16).at[:V, :].set(emb_table.astype(jnp.bfloat16))
        tokens = text.reshape(B * S, 1).astype(jnp.int32)

        grid_spec = pltpu.PrefetchScalarGridSpec(
            num_scalar_prefetch=0,
            grid=grid,
            in_specs=[
                pl.BlockSpec((N, 1), lambda i, *_: (i, 0)),    # token ids for this step
                const_spec((V_pad, E)),                        # embedding table (resident)
                const_spec((E, H1)),                           # fused first+hidden weight
                const_spec((1, H1)),                           # fused bias
                const_spec((H1, O_pad)),                       # last_fc weight (lane-padded)
                const_spec((1, O_pad)),                        # last_fc bias (lane-padded)
            ],
            out_specs=out_spec,
        )
        out = pl.pallas_call(
            mlp_vmem_kernel,
            out_shape=jax.ShapeDtypeStruct((B, O_pad), jnp.float32),
            grid_spec=grid_spec,
            compiler_params=pltpu.CompilerParams(
                dimension_semantics=("parallel",),             # no cross-step state
                vmem_limit_bytes=int(vmem_limit),
            ),
        )(tokens, emb_p, w12_b, b12, wl_b, bl_p)
    else:
        # ---- Path B: HBM table, double-buffered bf16 row-DMA gather --------------------
        emb_b = emb_table.astype(jnp.bfloat16)
        tokens = text.reshape(-1).astype(jnp.int32)            # scalar prefetch (SMEM)

        grid_spec = pltpu.PrefetchScalarGridSpec(
            num_scalar_prefetch=1,
            grid=grid,
            in_specs=[
                pl.BlockSpec(memory_space=pl.ANY),             # table stays in HBM
                const_spec((E, H1)),
                const_spec((1, H1)),
                const_spec((H1, O_pad)),
                const_spec((1, O_pad)),
            ],
            out_specs=out_spec,
            scratch_shapes=[
                pltpu.VMEM((2, N, E), jnp.bfloat16),           # gather double buffer
                pltpu.SemaphoreType.DMA((2,)),                 # one semaphore per slot
            ],
        )
        out = pl.pallas_call(
            mlp_hbm_kernel,
            out_shape=jax.ShapeDtypeStruct((B, O_pad), jnp.float32),
            grid_spec=grid_spec,
            compiler_params=pltpu.CompilerParams(
                # cross-step prefetch carries state between grid steps -> keep sequential
                dimension_semantics=("arbitrary",),
                vmem_limit_bytes=int(vmem_limit),
            ),
        )(tokens, emb_b, w12_b, b12, wl_b, bl_p)

    return out[:, :O]


def mlp_reference(text, emb_table, w1, b1, w2, b2, wl, bl):
    x = jnp.take(emb_table, text, axis=0)                 # (B, S, E) embedding
    x = x @ w1 + b1                                       # first_fc (no activation)
    x = jnp.maximum(x @ w2 + b2, 0.0)                     # hidden fc + relu (dropout = id)
    pooled = jnp.max(x, axis=1)                           # max-pool over seq
    return pooled @ wl + bl                               # last_fc


if __name__ == "__main__":
    # small shapes consistent with the module
    B, S = 2, 8
    vocab, E = 50, 32
    hidden_dims = [32, 32]
    output_dim = 4

    key = jax.random.PRNGKey(0)
    k_emb, k_txt, k_w1, k_b1, k_w2, k_b2, k_wl, k_bl = jax.random.split(key, 8)

    emb_table = jax.random.normal(k_emb, (vocab, E), dtype=jnp.float32) * 0.1
    text = jax.random.randint(k_txt, (B, S), 0, vocab, dtype=jnp.int32)

    w1 = jax.random.normal(k_w1, (E, hidden_dims[0]), dtype=jnp.float32) * 0.1
    b1 = jax.random.normal(k_b1, (1, hidden_dims[0]), dtype=jnp.float32) * 0.1
    w2 = jax.random.normal(k_w2, (hidden_dims[0], hidden_dims[1]), dtype=jnp.float32) * 0.1
    b2 = jax.random.normal(k_b2, (1, hidden_dims[1]), dtype=jnp.float32) * 0.1
    wl = jax.random.normal(k_wl, (hidden_dims[1], output_dim), dtype=jnp.float32) * 0.1
    bl = jax.random.normal(k_bl, (1, output_dim), dtype=jnp.float32) * 0.1

    out = mlp_forward(text, emb_table, w1, b1, w2, b2, wl, bl)
    out = jax.block_until_ready(out)

    ref = mlp_reference(text, emb_table, w1, b1, w2, b2, wl, bl)
    assert out.shape == (B, output_dim), out.shape
    # bf16 MXU operands with f32 accumulation -> small relative error vs the f32 reference
    assert jnp.allclose(out, ref, atol=2e-2, rtol=2e-2), (out, ref)

    # TODO(synk): dropout is implemented as identity (inference mode); training-mode
    # stochastic dropout would use pltpu.prng_seed/prng_random_bits inside the kernel.
    print("KERNEL_OK")
</pallas_src>

<mosaic_0001>
module attributes {stable_mosaic.version = 11 : i64} {
  func.func @mlp_vmem_kernel(%arg0: i32, %arg1: memref<16x1xi32, #tpu.memory_space<vmem>>, %arg2: memref<128x32xbf16, #tpu.memory_space<vmem>>, %arg3: memref<32x32xbf16, #tpu.memory_space<vmem>>, %arg4: memref<1x32xf32, #tpu.memory_space<vmem>>, %arg5: memref<32x128xbf16, #tpu.memory_space<vmem>>, %arg6: memref<1x128xf32, #tpu.memory_space<vmem>>, %arg7: memref<2x128xf32, #tpu.memory_space<vmem>>) attributes {dimension_semantics = [#tpu.dimension_semantics<parallel>], iteration_bounds = array<i64: 1>, scalar_prefetch = 0 : i64, scratch_operands = 0 : i64, tpu.core_type = #tpu.core_type<tc>, window_params = [{transform_indices = @transform_0, window_bounds = array<i64: 16, 1>}, {pipeline_mode = #tpu.pipeline_mode<synchronous>, transform_indices = @transform_1, window_bounds = array<i64: 128, 32>}, {pipeline_mode = #tpu.pipeline_mode<synchronous>, transform_indices = @transform_2, window_bounds = array<i64: 32, 32>}, {pipeline_mode = #tpu.pipeline_mode<synchronous>, transform_indices = @transform_3, window_bounds = array<i64: 1, 32>}, {pipeline_mode = #tpu.pipeline_mode<synchronous>, transform_indices = @transform_4, window_bounds = array<i64: 32, 128>}, {pipeline_mode = #tpu.pipeline_mode<synchronous>, transform_indices = @transform_5, window_bounds = array<i64: 1, 128>}, {transform_indices = @transform_6, window_bounds = array<i64: 2, 128>}]} {
    %c0 = arith.constant 0 : index
    %c0_0 = arith.constant 0 : index
    %0 = vector.load %arg1[%c0, %c0_0] : memref<16x1xi32, #tpu.memory_space<vmem>>, vector<16x1xi32>
    %1 = tpu.iota {dimensions = array<i32: 1>} : vector<16x128xi32>
    %2 = vector.broadcast %0 : vector<16x1xi32> to vector<16x128xi32>
    %3 = arith.cmpi eq, %1, %2 : vector<16x128xi32>
    %cst = arith.constant 1.000000e+00 : f32
    %cst_1 = arith.constant 0.000000e+00 : f32
    %4 = vector.broadcast %cst : f32 to vector<16x128xf32>
    %5 = vector.broadcast %cst_1 : f32 to vector<16x128xf32>
    %6 = arith.select %3, %4, %5 : vector<16x128xi1>, vector<16x128xf32>
    %7 = arith.truncf %6 : vector<16x128xf32> to vector<16x128xbf16>
    %c0_2 = arith.constant 0 : index
    %c0_3 = arith.constant 0 : index
    %8 = vector.load %arg2[%c0_2, %c0_3] : memref<128x32xbf16, #tpu.memory_space<vmem>>, vector<128x32xbf16>
    %cst_4 = arith.constant dense<0.000000e+00> : vector<16x32xf32>
    %9 = tpu.matmul %7, %8, %cst_4 {dimension_numbers = #tpu.dot_dimension_numbers<[1], [0], [0], [1], [0, 0, 1, 1], [], []>} : vector<16x128xbf16>, vector<128x32xbf16>, vector<16x32xf32> -> vector<16x32xf32>
    %10 = arith.truncf %9 : vector<16x32xf32> to vector<16x32xbf16>
    %c0_5 = arith.constant 0 : index
    %c0_6 = arith.constant 0 : index
    %11 = vector.load %arg3[%c0_5, %c0_6] : memref<32x32xbf16, #tpu.memory_space<vmem>>, vector<32x32xbf16>
    %cst_7 = arith.constant dense<0.000000e+00> : vector<16x32xf32>
    %12 = tpu.matmul %10, %11, %cst_7 {dimension_numbers = #tpu.dot_dimension_numbers<[1], [0], [0], [1], [0, 0, 1, 1], [], []>} : vector<16x32xbf16>, vector<32x32xbf16>, vector<16x32xf32> -> vector<16x32xf32>
    %c0_8 = arith.constant 0 : index
    %c0_9 = arith.constant 0 : index
    %13 = vector.load %arg4[%c0_8, %c0_9] : memref<1x32xf32, #tpu.memory_space<vmem>>, vector<1x32xf32>
    %14 = vector.broadcast %13 : vector<1x32xf32> to vector<16x32xf32>
    %15 = arith.addf %12, %14 : vector<16x32xf32>
    %cst_10 = arith.constant 0.000000e+00 : f32
    %16 = vector.broadcast %cst_10 : f32 to vector<16x32xf32>
    %17 = arith.maximumf %15, %16 : vector<16x32xf32>
    %18 = vector.shape_cast %17 : vector<16x32xf32> to vector<2x8x32xf32>
    %cst_11 = arith.constant dense<0xFF800000> : vector<2x32xf32>
    %19 = vector.multi_reduction <maximumf>, %18, %cst_11 [1] : vector<2x8x32xf32> to vector<2x32xf32>
    %20 = arith.truncf %19 : vector<2x32xf32> to vector<2x32xbf16>
    %c0_12 = arith.constant 0 : index
    %c0_13 = arith.constant 0 : index
    %21 = vector.load %arg5[%c0_12, %c0_13] : memref<32x128xbf16, #tpu.memory_space<vmem>>, vector<32x128xbf16>
    %cst_14 = arith.constant dense<0.000000e+00> : vector<2x128xf32>
    %22 = tpu.matmul %20, %21, %cst_14 {dimension_numbers = #tpu.dot_dimension_numbers<[1], [0], [0], [1], [0, 0, 1, 1], [], []>} : vector<2x32xbf16>, vector<32x128xbf16>, vector<2x128xf32> -> vector<2x128xf32>
    %c0_15 = arith.constant 0 : index
    %c0_16 = arith.constant 0 : index
    %23 = vector.load %arg6[%c0_15, %c0_16] : memref<1x128xf32, #tpu.memory_space<vmem>>, vector<1x128xf32>
    %24 = vector.broadcast %23 : vector<1x128xf32> to vector<2x128xf32>
    %25 = arith.addf %22, %24 : vector<2x128xf32>
    %c0_17 = arith.constant 0 : index
    %c0_18 = arith.constant 0 : index
    %26 = vector.load %arg7[%c0_17, %c0_18] : memref<2x128xf32, #tpu.memory_space<vmem>>, vector<2x128xf32>
    tpu.vector_store %arg7[%c0_17, %c0_18], %25 {strides = array<i32>} : memref<2x128xf32, #tpu.memory_space<vmem>>, vector<2x128xf32>,
    return
  }
  func.func @transform_0(%arg0: i32) -> (i32, i32) {
    %c0_i32 = arith.constant 0 : i32
    %c0_i32_0 = arith.constant 0 : i32
    return %arg0, %c0_i32 : i32, i32
  }
  func.func @transform_1(%arg0: i32) -> (i32, i32) {
    %c0_i32 = arith.constant 0 : i32
    %c0_i32_0 = arith.constant 0 : i32
    %c0_i32_1 = arith.constant 0 : i32
    return %c0_i32, %c0_i32_0 : i32, i32
  }
  func.func @transform_2(%arg0: i32) -> (i32, i32) {
    %c0_i32 = arith.constant 0 : i32
    %c0_i32_0 = arith.constant 0 : i32
    %c0_i32_1 = arith.constant 0 : i32
    return %c0_i32, %c0_i32_0 : i32, i32
  }
  func.func @transform_3(%arg0: i32) -> (i32, i32) {
    %c0_i32 = arith.constant 0 : i32
    %c0_i32_0 = arith.constant 0 : i32
    %c0_i32_1 = arith.constant 0 : i32
    return %c0_i32, %c0_i32_0 : i32, i32
  }
  func.func @transform_4(%arg0: i32) -> (i32, i32) {
    %c0_i32 = arith.constant 0 : i32
    %c0_i32_0 = arith.constant 0 : i32
    %c0_i32_1 = arith.constant 0 : i32
    return %c0_i32, %c0_i32_0 : i32, i32
  }
  func.func @transform_5(%arg0: i32) -> (i32, i32) {
    %c0_i32 = arith.constant 0 : i32
    %c0_i32_0 = arith.constant 0 : i32
    %c0_i32_1 = arith.constant 0 : i32
    return %c0_i32, %c0_i32_0 : i32, i32
  }
  func.func @transform_6(%arg0: i32) -> (i32, i32) {
    %c0_i32 = arith.constant 0 : i32
    %c0_i32_0 = arith.constant 0 : i32
    return %arg0, %c0_i32 : i32, i32
  }
}

</mosaic_0001>

<bundles_post_ra>
// kernel: tpu_custom_call.1
= control target key start
LH: loop header
LB: loop body
LE: loop exit
PB: predicated region body
PF: predicated region fallthrough
CT: control target
= control target key end

     0   :  { %v331_v2 = vmov 0   ;;  %s424_s0 = inlined_call_operand.vmem [shape: s32[16,1], index: 0, kind: input, shape index: {}]   ;;  %s425_s1 = inlined_call_operand.vmem [shape: bf16[128,32], index: 1, kind: input, shape index: {}]   ;;  %s426_s2 = inlined_call_operand.vmem [shape: bf16[32,32], index: 2, kind: input, shape index: {}]   ;;  %s427_s3 = inlined_call_operand.vmem [shape: f32[1,32], index: 3, kind: input, shape index: {}]   ;;  %s428_s4 = inlined_call_operand.vmem [shape: bf16[32,128], index: 4, kind: input, shape index: {}]   ;;  %s429_s5 = inlined_call_operand.vmem [shape: f32[1,128], index: 5, kind: input, shape index: {}]   ;;  %s430_s6 = inlined_call_operand.hbm [shape: f32[2,128], index: 6, kind: output, shape index: {}]  }
   0x1   :  { %v25_v0 = vld [vmem:[%s424_s0] sm:$0xff]  ;;  %v294_v1 = vld [vmem:[%s425_s1 + $0x38] sm:$0xff]  ;;  %302 = vset.pattern.permute.xlu0 %v331_v2  ;;  %v293_v3 = vld [vmem:[%s425_s1 + $0x30] sm:$0xff] }
   0x2   :  { %30 = vperm.xlu0 %302, %v25_v0   ;;  %104 = vmatpush.bf16.msra.mxu0 %v294_v1 }
   0x3   :  { %11 = vsyncpa [#allocation3], 0  ;;  %v292_v4 = vld [vmem:[%s425_s1 + $0x28] sm:$0xff]  ;;  %v291_v6 = vld [vmem:[%s425_s1 + $0x20] sm:$0xff]  ;;  %v27_v12 = vlaneseq  ;;  %v332_v15 = vmov 1.0|1.0  }
   0x4   :  { %v26_v5 = vld [vmem:[%s424_s0 + $0x8] sm:$0xff]  ;;  %v290_v7 = vld [vmem:[%s425_s1 + $0x18] sm:$0xff]  ;;  %v289_v8 = vld [vmem:[%s425_s1 + $0x10] sm:$0xff]  ;;  %vm139_vm3 = vcmask 261120   ;;  %vm187_vm4 = vcmask 1041409   ;;  %s226_s28 = sshll.u32 %s430_s6, 4  ;;  %s227_s28 = int_to_ptr.hbm [resolvable:$true] %s226_s28 }
   0x5   :  { %v288_v9 = vld [vmem:[%s425_s1 + $0x8] sm:$0xff]  ;;  %v287_v10 = vld [vmem:[%s425_s1] sm:$0xff]  ;;  %v28_v13 = vand.u32 127, %v27_v12 }
   0x6   :  { %105 = vmatpush.bf16.msra.mxu0 %v293_v3  ;;  %v296_v16 = vld [vmem:[%s426_s2 + $0x8] sm:$0xff]  ;;  %v295_v17 = vld [vmem:[%s426_s2] sm:$0xff] }
   0x7   :  { %149 = vmatpush.bf16.msra.mxu1 %v296_v16  ;;  %v298_v21 = vld [vmem:[%s428_s4 + $0x8] sm:$0xff]  ;;  %v297_v22 = vld [vmem:[%s428_s4] sm:$0xff]  ;;  %s333_s4 = smov [#allocation2]  }
   0x8   :  { %211 = vmatpush.bf16.msra.mxu2 %v298_v21  ;;  %v303_v23 = vld [vmem:[%s427_s3] ss:$0 sm:$0xff]  ;;  %s224_s25 = sshll.u32 %s333_s4, 4  ;;  %s225_s25 = int_to_ptr.vmem [resolvable:$true] %s224_s25 }
   0x9   :  { %v304_v50 = vld [vmem:[%s429_s5] ss:$0 sm:$0xff] }
   0xa   :  { %33 = vperm.xlu0 %302, %v26_v5   ;;  %106 = vmatpush.bf16.msra.mxu0 %v292_v4 }
   0xb   :  { %150 = vmatpush.bf16.msra.mxu1 %v295_v17 }
   0xc   :  { %212 = vmatpush.bf16.msra.mxu2 %v297_v22 }
   0xe   :  { %107 = vmatpush.bf16.msra.mxu0 %v291_v6 }
  0x12   :  { %108 = vmatpush.bf16.msra.mxu0 %v290_v7 }
  0x16   :  { %109 = vmatpush.bf16.msra.mxu0 %v289_v8 }
  0x1a   :  { %110 = vmatpush.bf16.msra.mxu0 %v288_v9 }
  0x1e   :  { %111 = vmatpush.bf16.msra.mxu0 %v287_v10 }
  0x74   :  { %v31_v11 = vpop.permute.xlu0 %30 }
  0x75   :  { %vm35_vm0 = vcmp.eq.s32.totalorder %v28_v13, %v31_v11 }
  0x7c   :  { %v34_v14 = vpop.permute.xlu0 %33 }
  0x7d   :  { %vm36_vm1 = vcmp.eq.s32.totalorder %v28_v13, %v34_v14 }
  0x7e   :  { %vm267_vm2 = vmpackc.low %vm36_vm1, %vm35_vm0 }
  0x7f   :  { %268 = vmatmul.msk.bf16.vlgmr.msra.gmra.mxu0 %vm267_vm2, %v332_v15 }
  0xfc   :  { %v113_v18 = vpop.f32.mrf.mxu0 }
 0x104   :  { %v115_v19 = vpop.f32.mrf.mxu0 }
 0x105   :  { %v118_v20 = vpack.c.bf16 %v115_v19, %v113_v18 }
 0x107   :  { %277 = vmatmul.msk.bf16.vlgmr.msra.gmra.mxu1 %vm139_vm3, %v118_v20 }
 0x184   :  { %v152_v24 = vpop.f32.mrf.mxu1 }
 0x185   :  { %v153_v25 = vadd.f32 %v303_v23, %v152_v24 }
 0x187   :  { %v157_v26 = vmax.f32 %v153_v25, 0.0 }
 0x189   :  { %v159_v27 = vsel %vm139_vm3, %v157_v26, -inf }
 0x18a   :  { %v160_v28 = vrot.slane %v159_v27, 4 }
 0x18c   :  { %v161_v29 = vmax.f32 %v159_v27, %v160_v28  ;;  %v154_v30 = vpop.f32.mrf.mxu1 }
 0x18d   :  { %v155_v31 = vadd.f32 %v303_v23, %v154_v30 }
 0x18e   :  { %v162_v32 = vrot.slane %v161_v29, 2 }
 0x18f   :  { %v158_v33 = vmax.f32 %v155_v31, 0.0 }
 0x190   :  { %v163_v34 = vmax.f32 %v161_v29, %v162_v32 }
 0x191   :  { %v166_v35 = vsel %vm139_vm3, %v158_v33, -inf }
 0x192   :  { %v167_v36 = vrot.slane %v166_v35, 4  ;;  %v164_v37 = vrot.slane %v163_v34, 1 }
 0x194   :  { %v168_v38 = vmax.f32 %v166_v35, %v167_v36  ;;  %v165_v40 = vmax.f32 %v163_v34, %v164_v37 }
 0x196   :  { %v169_v39 = vrot.slane %v168_v38, 2  ;;  %v173_v43 = vpack.c.bf16 %v165_v40, %v165_v40 }
 0x198   :  { %v170_v41 = vmax.f32 %v168_v38, %v169_v39  ;;  %v185_v46 = vunpack.c.l.b16 %v173_v43 }
 0x19a   :  { %v171_v42 = vrot.slane %v170_v41, 1 }
 0x19c   :  { %v172_v44 = vmax.f32 %v170_v41, %v171_v42 }
 0x19e   :  { %v174_v45 = vpack.c.bf16 %v172_v44, %v172_v44 }
 0x1a0   :  { %v186_v47 = vunpack.c.l.b16 %v174_v45 }
 0x1a2   :  { %v188_v48 = vsel %vm187_vm4, %v186_v47, %v185_v46 }
 0x1a3   :  { %v189_v49 = vpack.c.b16 %v188_v48, %v188_v48 }
 0x1a5   :  { %286 = vmatmul.msk.bf16.vlgmr.msra.gmra.mxu2 %vm139_vm3, %v189_v49 }
 0x228   :  { %v214_v51 = vpop.f32.mrf.mxu2 }
 0x229   :  { %v215_v52 = vadd.f32 %v304_v50, %v214_v51 }
 0x22b   :  { %218 = vst [vmem:[#allocation2] sm:$0x3] %v215_v52 }
 0x22c   :  { %229 = dma.vmem_to_hbm [thread:$0]  %s225_s25, 32, %s227_s28, [#allocation3]  }
 0x230   :  { %v216_v53 = vpop.f32.mrf.mxu2 }
 0x231   :  { %329 = dma.done.wait [#allocation3], 32  }
 0x232   :  { %330 = vsyncadd [#allocation3], 4294967264 }
 0x233   :  { %234 = vsyncpa [#allocation3], 1 }

</bundles_post_ra>
